<compile_context>
chip_gen: v5e
topology: v5e:2x2
jax: 0.10.0
libtpu: 0.0.40
codegen_flags: <defaults>
</compile_context>

<pallas_src>
import functools
import math

import jax
import jax.numpy as jnp
from jax.experimental import pallas as pl
from jax.experimental.pallas import tpu as pltpu


def selfatt_kernel(x_ref, mask_ref, wq_ref, bq_ref, wk_ref, bk_ref,
                   wv_ref, bv_ref, wo_ref, bo_ref, g_ref, beta_ref,
                   out_ref, *, num_heads, head_dim):
    # One batch element per grid step. All math in f32.
    x = x_ref[0].astype(jnp.float32)            # [S, H]
    mask = mask_ref[0].astype(jnp.float32)      # [1, S] additive mask

    # Hoisted scalar/vector parameters (read once per grid step).
    bq = bq_ref[...].astype(jnp.float32)        # [1, H]
    bk = bk_ref[...].astype(jnp.float32)
    bv = bv_ref[...].astype(jnp.float32)
    bo = bo_ref[...].astype(jnp.float32)
    gamma = g_ref[...].astype(jnp.float32)
    beta = beta_ref[...].astype(jnp.float32)

    # QKV projections: [S, H] @ [H, H] + [1, H]
    q = jnp.dot(x, wq_ref[...], preferred_element_type=jnp.float32) + bq
    k = jnp.dot(x, wk_ref[...], preferred_element_type=jnp.float32) + bk
    v = jnp.dot(x, wv_ref[...], preferred_element_type=jnp.float32) + bv

    scale = 1.0 / math.sqrt(head_dim)

    # Per-head attention with 2-D matmuls (static unroll over heads).
    ctx_parts = []
    for h in range(num_heads):
        sl = slice(h * head_dim, (h + 1) * head_dim)
        qh = q[:, sl]                           # [S, hd]
        kh = k[:, sl]                           # [S, hd]
        vh = v[:, sl]                           # [S, hd]

        # q @ k^T via NT dot_general (no materialized transpose)
        s = jax.lax.dot_general(
            qh, kh, (((1,), (1,)), ((), ())),
            preferred_element_type=jnp.float32)          # [S, S]
        s = s * scale + mask                             # broadcast [1,S]->[S,S]

        # numerically stable softmax over keys
        s = s - jnp.max(s, axis=-1, keepdims=True)
        p = jnp.exp(s)
        p = p * pl.reciprocal(jnp.sum(p, axis=-1, keepdims=True), approx=False)

        # TODO(synk): attention_probs dropout omitted (identity in eval mode).
        ctx_parts.append(
            jnp.dot(p, vh, preferred_element_type=jnp.float32))  # [S, hd]

    # Merge heads back to [S, H] so the output projection is one full-K matmul.
    ctx = jnp.concatenate(ctx_parts, axis=-1)

    # Output projection + residual
    hidden = jnp.dot(ctx, wo_ref[...], preferred_element_type=jnp.float32) + bo
    # TODO(synk): hidden_dropout omitted (identity in eval mode).
    y = hidden + x

    # LayerNorm (eps=1e-12), single-pass mean / variance (biased).
    mu = jnp.mean(y, axis=-1, keepdims=True)
    var = jnp.mean(y * y, axis=-1, keepdims=True) - mu * mu
    y = (y - mu) * jax.lax.rsqrt(var + 1e-12)
    out_ref[0] = (y * gamma + beta).astype(out_ref.dtype)


def bert_selfatt_layer(x, attention_mask, wq, bq, wk, bk, wv, bv, wo, bo,
                       gamma, beta, *, num_heads):
    """x: [B, S, H]; attention_mask: additive mask broadcastable to [B,1,1,S]."""
    B, S, H = x.shape
    assert H % num_heads == 0
    head_dim = H // num_heads

    # additive mask as [B, 1, S] so its block is lane-dense in S
    mask3d = jnp.broadcast_to(
        attention_mask.reshape(B, 1, -1)[:, :, -S:], (B, 1, S)
    ).astype(jnp.float32)

    kernel = functools.partial(
        selfatt_kernel, num_heads=num_heads, head_dim=head_dim)

    # Weights / biases: constant index_map -> fetched once, VMEM-resident.
    wspec = pl.BlockSpec((H, H), lambda b: (0, 0))
    vspec = pl.BlockSpec((1, H), lambda b: (0, 0))

    return pl.pallas_call(
        kernel,
        out_shape=jax.ShapeDtypeStruct((B, S, H), jnp.float32),
        grid=(B,),
        in_specs=[
            pl.BlockSpec((1, S, H), lambda b: (b, 0, 0)),   # x (pipelined)
            pl.BlockSpec((1, 1, S), lambda b: (b, 0, 0)),   # mask (pipelined)
            wspec, vspec,                                   # Wq, bq
            wspec, vspec,                                   # Wk, bk
            wspec, vspec,                                   # Wv, bv
            wspec, vspec,                                   # Wo, bo
            vspec, vspec,                                   # gamma, beta
        ],
        out_specs=pl.BlockSpec((1, S, H), lambda b: (b, 0, 0)),
        compiler_params=pltpu.CompilerParams(
            dimension_semantics=("parallel",),
            vmem_limit_bytes=48 * 1024 * 1024,
        ),
    )(x, mask3d, wq, bq, wk, bk, wv, bv, wo, bo, gamma, beta)


def reference(x, attention_mask, wq, bq, wk, bk, wv, bv, wo, bo, gamma, beta,
              num_heads):
    B, S, H = x.shape
    hd = H // num_heads
    q = x @ wq + bq
    k = x @ wk + bk
    v = x @ wv + bv

    def split(t):
        return t.reshape(B, S, num_heads, hd).transpose(0, 2, 1, 3)

    qh, kh, vh = split(q), split(k), split(v)
    s = jnp.einsum('bhqd,bhkd->bhqk', qh, kh) / math.sqrt(hd)
    s = s + attention_mask.reshape(B, 1, 1, S)
    p = jax.nn.softmax(s, axis=-1)
    ctx = jnp.einsum('bhqk,bhkd->bhqd', p, vh)
    ctx = ctx.transpose(0, 2, 1, 3).reshape(B, S, H)
    hdn = ctx @ wo + bo
    y = hdn + x
    mu = jnp.mean(y, axis=-1, keepdims=True)
    var = jnp.mean((y - mu) ** 2, axis=-1, keepdims=True)
    return (y - mu) * jax.lax.rsqrt(var + 1e-12) * gamma + beta


if __name__ == "__main__":
    B = 2            # batch
    S = 8            # sequence length
    H = 32           # hidden_size
    NUM_HEADS = 4    # num_attention_heads (head_dim = 8)

    key = jax.random.PRNGKey(0)
    (k_x, k_wq, k_bq, k_wk, k_bk, k_wv, k_bv, k_wo, k_bo,
     k_g, k_be) = jax.random.split(key, 11)

    x = jax.random.normal(k_x, (B, S, H), dtype=jnp.float32)

    scl = 1.0 / math.sqrt(H)
    wq = jax.random.normal(k_wq, (H, H), dtype=jnp.float32) * scl
    bq = jax.random.normal(k_bq, (1, H), dtype=jnp.float32) * 0.02
    wk = jax.random.normal(k_wk, (H, H), dtype=jnp.float32) * scl
    bk = jax.random.normal(k_bk, (1, H), dtype=jnp.float32) * 0.02
    wv = jax.random.normal(k_wv, (H, H), dtype=jnp.float32) * scl
    bv = jax.random.normal(k_bv, (1, H), dtype=jnp.float32) * 0.02
    wo = jax.random.normal(k_wo, (H, H), dtype=jnp.float32) * scl
    bo = jax.random.normal(k_bo, (1, H), dtype=jnp.float32) * 0.02
    gamma = 1.0 + 0.1 * jax.random.normal(k_g, (1, H), dtype=jnp.float32)
    beta = 0.1 * jax.random.normal(k_be, (1, H), dtype=jnp.float32)

    # BERT-style additive mask [B, 1, 1, S]: batch 1 has its last 2 key
    # positions masked out.
    keep = jnp.ones((B, S), dtype=jnp.float32)
    keep = keep.at[1, -2:].set(0.0)
    attention_mask = ((1.0 - keep) * -10000.0).reshape(B, 1, 1, S)

    out = bert_selfatt_layer(x, attention_mask, wq, bq, wk, bk, wv, bv,
                             wo, bo, gamma, beta, num_heads=NUM_HEADS)
    out = jax.block_until_ready(out)

    ref = reference(x, attention_mask, wq, bq, wk, bk, wv, bv, wo, bo,
                    gamma, beta, NUM_HEADS)
    assert out.shape == (B, S, H)
    assert jnp.allclose(out, ref, atol=1e-4, rtol=1e-4), \
        "mismatch vs pure-JAX reference"

    print("KERNEL_OK")
</pallas_src>

<mosaic_0001>
module attributes {stable_mosaic.version = 11 : i64} {
  func.func @selfatt_kernel(%arg0: i32, %arg1: memref<1x8x32xf32, #tpu.memory_space<vmem>>, %arg2: memref<1x1x8xf32, #tpu.memory_space<vmem>>, %arg3: memref<32x32xf32, #tpu.memory_space<vmem>>, %arg4: memref<1x32xf32, #tpu.memory_space<vmem>>, %arg5: memref<32x32xf32, #tpu.memory_space<vmem>>, %arg6: memref<1x32xf32, #tpu.memory_space<vmem>>, %arg7: memref<32x32xf32, #tpu.memory_space<vmem>>, %arg8: memref<1x32xf32, #tpu.memory_space<vmem>>, %arg9: memref<32x32xf32, #tpu.memory_space<vmem>>, %arg10: memref<1x32xf32, #tpu.memory_space<vmem>>, %arg11: memref<1x32xf32, #tpu.memory_space<vmem>>, %arg12: memref<1x32xf32, #tpu.memory_space<vmem>>, %arg13: memref<1x8x32xf32, #tpu.memory_space<vmem>>) attributes {dimension_semantics = [#tpu.dimension_semantics<parallel>], iteration_bounds = array<i64: 2>, scalar_prefetch = 0 : i64, scratch_operands = 0 : i64, tpu.core_type = #tpu.core_type<tc>, window_params = [{transform_indices = @transform_0, window_bounds = array<i64: 1, 8, 32>}, {transform_indices = @transform_1, window_bounds = array<i64: 1, 1, 8>}, {pipeline_mode = #tpu.pipeline_mode<synchronous>, transform_indices = @transform_2, window_bounds = array<i64: 32, 32>}, {pipeline_mode = #tpu.pipeline_mode<synchronous>, transform_indices = @transform_3, window_bounds = array<i64: 1, 32>}, {pipeline_mode = #tpu.pipeline_mode<synchronous>, transform_indices = @transform_4, window_bounds = array<i64: 32, 32>}, {pipeline_mode = #tpu.pipeline_mode<synchronous>, transform_indices = @transform_5, window_bounds = array<i64: 1, 32>}, {pipeline_mode = #tpu.pipeline_mode<synchronous>, transform_indices = @transform_6, window_bounds = array<i64: 32, 32>}, {pipeline_mode = #tpu.pipeline_mode<synchronous>, transform_indices = @transform_7, window_bounds = array<i64: 1, 32>}, {pipeline_mode = #tpu.pipeline_mode<synchronous>, transform_indices = @transform_8, window_bounds = array<i64: 32, 32>}, {pipeline_mode = #tpu.pipeline_mode<synchronous>, transform_indices = @transform_9, window_bounds = array<i64: 1, 32>}, {pipeline_mode = #tpu.pipeline_mode<synchronous>, transform_indices = @transform_10, window_bounds = array<i64: 1, 32>}, {pipeline_mode = #tpu.pipeline_mode<synchronous>, transform_indices = @transform_11, window_bounds = array<i64: 1, 32>}, {transform_indices = @transform_12, window_bounds = array<i64: 1, 8, 32>}]} {
    %c0 = arith.constant 0 : index
    %c0_0 = arith.constant 0 : index
    %c0_1 = arith.constant 0 : index
    %0 = vector.load %arg1[%c0, %c0_0, %c0_1] : memref<1x8x32xf32, #tpu.memory_space<vmem>>, vector<1x8x32xf32>
    %1 = vector.shape_cast %0 : vector<1x8x32xf32> to vector<8x32xf32>
    %c0_2 = arith.constant 0 : index
    %c0_3 = arith.constant 0 : index
    %c0_4 = arith.constant 0 : index
    %2 = vector.load %arg2[%c0_2, %c0_3, %c0_4] : memref<1x1x8xf32, #tpu.memory_space<vmem>>, vector<1x1x8xf32>
    %3 = vector.shape_cast %2 : vector<1x1x8xf32> to vector<1x8xf32>
    %c0_5 = arith.constant 0 : index
    %c0_6 = arith.constant 0 : index
    %4 = vector.load %arg4[%c0_5, %c0_6] : memref<1x32xf32, #tpu.memory_space<vmem>>, vector<1x32xf32>
    %c0_7 = arith.constant 0 : index
    %c0_8 = arith.constant 0 : index
    %5 = vector.load %arg6[%c0_7, %c0_8] : memref<1x32xf32, #tpu.memory_space<vmem>>, vector<1x32xf32>
    %c0_9 = arith.constant 0 : index
    %c0_10 = arith.constant 0 : index
    %6 = vector.load %arg8[%c0_9, %c0_10] : memref<1x32xf32, #tpu.memory_space<vmem>>, vector<1x32xf32>
    %c0_11 = arith.constant 0 : index
    %c0_12 = arith.constant 0 : index
    %7 = vector.load %arg10[%c0_11, %c0_12] : memref<1x32xf32, #tpu.memory_space<vmem>>, vector<1x32xf32>
    %c0_13 = arith.constant 0 : index
    %c0_14 = arith.constant 0 : index
    %8 = vector.load %arg11[%c0_13, %c0_14] : memref<1x32xf32, #tpu.memory_space<vmem>>, vector<1x32xf32>
    %c0_15 = arith.constant 0 : index
    %c0_16 = arith.constant 0 : index
    %9 = vector.load %arg12[%c0_15, %c0_16] : memref<1x32xf32, #tpu.memory_space<vmem>>, vector<1x32xf32>
    %c0_17 = arith.constant 0 : index
    %c0_18 = arith.constant 0 : index
    %10 = vector.load %arg3[%c0_17, %c0_18] : memref<32x32xf32, #tpu.memory_space<vmem>>, vector<32x32xf32>
    %cst = arith.constant dense<0.000000e+00> : vector<8x32xf32>
    %11 = tpu.matmul %1, %10, %cst {dimension_numbers = #tpu.dot_dimension_numbers<[1], [0], [0], [1], [0, 0, 1, 1], [], []>} : vector<8x32xf32>, vector<32x32xf32>, vector<8x32xf32> -> vector<8x32xf32>
    %12 = vector.broadcast %4 : vector<1x32xf32> to vector<8x32xf32>
    %13 = arith.addf %11, %12 : vector<8x32xf32>
    %c0_19 = arith.constant 0 : index
    %c0_20 = arith.constant 0 : index
    %14 = vector.load %arg5[%c0_19, %c0_20] : memref<32x32xf32, #tpu.memory_space<vmem>>, vector<32x32xf32>
    %cst_21 = arith.constant dense<0.000000e+00> : vector<8x32xf32>
    %15 = tpu.matmul %1, %14, %cst_21 {dimension_numbers = #tpu.dot_dimension_numbers<[1], [0], [0], [1], [0, 0, 1, 1], [], []>} : vector<8x32xf32>, vector<32x32xf32>, vector<8x32xf32> -> vector<8x32xf32>
    %16 = vector.broadcast %5 : vector<1x32xf32> to vector<8x32xf32>
    %17 = arith.addf %15, %16 : vector<8x32xf32>
    %c0_22 = arith.constant 0 : index
    %c0_23 = arith.constant 0 : index
    %18 = vector.load %arg7[%c0_22, %c0_23] : memref<32x32xf32, #tpu.memory_space<vmem>>, vector<32x32xf32>
    %cst_24 = arith.constant dense<0.000000e+00> : vector<8x32xf32>
    %19 = tpu.matmul %1, %18, %cst_24 {dimension_numbers = #tpu.dot_dimension_numbers<[1], [0], [0], [1], [0, 0, 1, 1], [], []>} : vector<8x32xf32>, vector<32x32xf32>, vector<8x32xf32> -> vector<8x32xf32>
    %20 = vector.broadcast %6 : vector<1x32xf32> to vector<8x32xf32>
    %21 = arith.addf %19, %20 : vector<8x32xf32>
    %22 = vector.extract_strided_slice %13 {offsets = [0, 0], sizes = [8, 8], strides = [1, 1]} : vector<8x32xf32> to vector<8x8xf32>
    %23 = vector.extract_strided_slice %17 {offsets = [0, 0], sizes = [8, 8], strides = [1, 1]} : vector<8x32xf32> to vector<8x8xf32>
    %24 = vector.extract_strided_slice %21 {offsets = [0, 0], sizes = [8, 8], strides = [1, 1]} : vector<8x32xf32> to vector<8x8xf32>
    %cst_25 = arith.constant dense<0.000000e+00> : vector<8x8xf32>
    %25 = tpu.matmul %22, %23, %cst_25 {dimension_numbers = #tpu.dot_dimension_numbers<[1], [1], [0], [0], [0, 0, 1, 0], [], []>} : vector<8x8xf32>, vector<8x8xf32>, vector<8x8xf32> -> vector<8x8xf32>
    %cst_26 = arith.constant 0.353553385 : f32
    %26 = vector.broadcast %cst_26 : f32 to vector<8x8xf32>
    %27 = arith.mulf %25, %26 : vector<8x8xf32>
    %28 = vector.broadcast %3 : vector<1x8xf32> to vector<8x8xf32>
    %29 = arith.addf %27, %28 : vector<8x8xf32>
    %cst_27 = arith.constant dense<0xFF800000> : vector<8xf32>
    %30 = vector.multi_reduction <maximumf>, %29, %cst_27 [1] : vector<8x8xf32> to vector<8xf32>
    %31 = vector.shape_cast %30 : vector<8xf32> to vector<8x1xf32>
    %32 = vector.broadcast %31 : vector<8x1xf32> to vector<8x8xf32>
    %33 = arith.subf %29, %32 : vector<8x8xf32>
    %34 = math.exp %33 : vector<8x8xf32>
    %cst_28 = arith.constant dense<0.000000e+00> : vector<8xf32>
    %35 = vector.multi_reduction <add>, %34, %cst_28 [1] : vector<8x8xf32> to vector<8xf32>
    %36 = vector.shape_cast %35 : vector<8xf32> to vector<8x1xf32>
    %37 = tpu.reciprocal %36 : vector<8x1xf32> -> vector<8x1xf32>
    %38 = vector.broadcast %37 : vector<8x1xf32> to vector<8x8xf32>
    %39 = arith.mulf %34, %38 : vector<8x8xf32>
    %cst_29 = arith.constant dense<0.000000e+00> : vector<8x8xf32>
    %40 = tpu.matmul %39, %24, %cst_29 {dimension_numbers = #tpu.dot_dimension_numbers<[1], [0], [0], [1], [0, 0, 1, 1], [], []>} : vector<8x8xf32>, vector<8x8xf32>, vector<8x8xf32> -> vector<8x8xf32>
    %41 = vector.extract_strided_slice %13 {offsets = [0, 8], sizes = [8, 8], strides = [1, 1]} : vector<8x32xf32> to vector<8x8xf32>
    %42 = vector.extract_strided_slice %17 {offsets = [0, 8], sizes = [8, 8], strides = [1, 1]} : vector<8x32xf32> to vector<8x8xf32>
    %43 = vector.extract_strided_slice %21 {offsets = [0, 8], sizes = [8, 8], strides = [1, 1]} : vector<8x32xf32> to vector<8x8xf32>
    %cst_30 = arith.constant dense<0.000000e+00> : vector<8x8xf32>
    %44 = tpu.matmul %41, %42, %cst_30 {dimension_numbers = #tpu.dot_dimension_numbers<[1], [1], [0], [0], [0, 0, 1, 0], [], []>} : vector<8x8xf32>, vector<8x8xf32>, vector<8x8xf32> -> vector<8x8xf32>
    %cst_31 = arith.constant 0.353553385 : f32
    %45 = vector.broadcast %cst_31 : f32 to vector<8x8xf32>
    %46 = arith.mulf %44, %45 : vector<8x8xf32>
    %47 = vector.broadcast %3 : vector<1x8xf32> to vector<8x8xf32>
    %48 = arith.addf %46, %47 : vector<8x8xf32>
    %cst_32 = arith.constant dense<0xFF800000> : vector<8xf32>
    %49 = vector.multi_reduction <maximumf>, %48, %cst_32 [1] : vector<8x8xf32> to vector<8xf32>
    %50 = vector.shape_cast %49 : vector<8xf32> to vector<8x1xf32>
    %51 = vector.broadcast %50 : vector<8x1xf32> to vector<8x8xf32>
    %52 = arith.subf %48, %51 : vector<8x8xf32>
    %53 = math.exp %52 : vector<8x8xf32>
    %cst_33 = arith.constant dense<0.000000e+00> : vector<8xf32>
    %54 = vector.multi_reduction <add>, %53, %cst_33 [1] : vector<8x8xf32> to vector<8xf32>
    %55 = vector.shape_cast %54 : vector<8xf32> to vector<8x1xf32>
    %56 = tpu.reciprocal %55 : vector<8x1xf32> -> vector<8x1xf32>
    %57 = vector.broadcast %56 : vector<8x1xf32> to vector<8x8xf32>
    %58 = arith.mulf %53, %57 : vector<8x8xf32>
    %cst_34 = arith.constant dense<0.000000e+00> : vector<8x8xf32>
    %59 = tpu.matmul %58, %43, %cst_34 {dimension_numbers = #tpu.dot_dimension_numbers<[1], [0], [0], [1], [0, 0, 1, 1], [], []>} : vector<8x8xf32>, vector<8x8xf32>, vector<8x8xf32> -> vector<8x8xf32>
    %60 = vector.extract_strided_slice %13 {offsets = [0, 16], sizes = [8, 8], strides = [1, 1]} : vector<8x32xf32> to vector<8x8xf32>
    %61 = vector.extract_strided_slice %17 {offsets = [0, 16], sizes = [8, 8], strides = [1, 1]} : vector<8x32xf32> to vector<8x8xf32>
    %62 = vector.extract_strided_slice %21 {offsets = [0, 16], sizes = [8, 8], strides = [1, 1]} : vector<8x32xf32> to vector<8x8xf32>
    %cst_35 = arith.constant dense<0.000000e+00> : vector<8x8xf32>
    %63 = tpu.matmul %60, %61, %cst_35 {dimension_numbers = #tpu.dot_dimension_numbers<[1], [1], [0], [0], [0, 0, 1, 0], [], []>} : vector<8x8xf32>, vector<8x8xf32>, vector<8x8xf32> -> vector<8x8xf32>
    %cst_36 = arith.constant 0.353553385 : f32
    %64 = vector.broadcast %cst_36 : f32 to vector<8x8xf32>
    %65 = arith.mulf %63, %64 : vector<8x8xf32>
    %66 = vector.broadcast %3 : vector<1x8xf32> to vector<8x8xf32>
    %67 = arith.addf %65, %66 : vector<8x8xf32>
    %cst_37 = arith.constant dense<0xFF800000> : vector<8xf32>
    %68 = vector.multi_reduction <maximumf>, %67, %cst_37 [1] : vector<8x8xf32> to vector<8xf32>
    %69 = vector.shape_cast %68 : vector<8xf32> to vector<8x1xf32>
    %70 = vector.broadcast %69 : vector<8x1xf32> to vector<8x8xf32>
    %71 = arith.subf %67, %70 : vector<8x8xf32>
    %72 = math.exp %71 : vector<8x8xf32>
    %cst_38 = arith.constant dense<0.000000e+00> : vector<8xf32>
    %73 = vector.multi_reduction <add>, %72, %cst_38 [1] : vector<8x8xf32> to vector<8xf32>
    %74 = vector.shape_cast %73 : vector<8xf32> to vector<8x1xf32>
    %75 = tpu.reciprocal %74 : vector<8x1xf32> -> vector<8x1xf32>
    %76 = vector.broadcast %75 : vector<8x1xf32> to vector<8x8xf32>
    %77 = arith.mulf %72, %76 : vector<8x8xf32>
    %cst_39 = arith.constant dense<0.000000e+00> : vector<8x8xf32>
    %78 = tpu.matmul %77, %62, %cst_39 {dimension_numbers = #tpu.dot_dimension_numbers<[1], [0], [0], [1], [0, 0, 1, 1], [], []>} : vector<8x8xf32>, vector<8x8xf32>, vector<8x8xf32> -> vector<8x8xf32>
    %79 = vector.extract_strided_slice %13 {offsets = [0, 24], sizes = [8, 8], strides = [1, 1]} : vector<8x32xf32> to vector<8x8xf32>
    %80 = vector.extract_strided_slice %17 {offsets = [0, 24], sizes = [8, 8], strides = [1, 1]} : vector<8x32xf32> to vector<8x8xf32>
    %81 = vector.extract_strided_slice %21 {offsets = [0, 24], sizes = [8, 8], strides = [1, 1]} : vector<8x32xf32> to vector<8x8xf32>
    %cst_40 = arith.constant dense<0.000000e+00> : vector<8x8xf32>
    %82 = tpu.matmul %79, %80, %cst_40 {dimension_numbers = #tpu.dot_dimension_numbers<[1], [1], [0], [0], [0, 0, 1, 0], [], []>} : vector<8x8xf32>, vector<8x8xf32>, vector<8x8xf32> -> vector<8x8xf32>
    %cst_41 = arith.constant 0.353553385 : f32
    %83 = vector.broadcast %cst_41 : f32 to vector<8x8xf32>
    %84 = arith.mulf %82, %83 : vector<8x8xf32>
    %85 = vector.broadcast %3 : vector<1x8xf32> to vector<8x8xf32>
    %86 = arith.addf %84, %85 : vector<8x8xf32>
    %cst_42 = arith.constant dense<0xFF800000> : vector<8xf32>
    %87 = vector.multi_reduction <maximumf>, %86, %cst_42 [1] : vector<8x8xf32> to vector<8xf32>
    %88 = vector.shape_cast %87 : vector<8xf32> to vector<8x1xf32>
    %89 = vector.broadcast %88 : vector<8x1xf32> to vector<8x8xf32>
    %90 = arith.subf %86, %89 : vector<8x8xf32>
    %91 = math.exp %90 : vector<8x8xf32>
    %cst_43 = arith.constant dense<0.000000e+00> : vector<8xf32>
    %92 = vector.multi_reduction <add>, %91, %cst_43 [1] : vector<8x8xf32> to vector<8xf32>
    %93 = vector.shape_cast %92 : vector<8xf32> to vector<8x1xf32>
    %94 = tpu.reciprocal %93 : vector<8x1xf32> -> vector<8x1xf32>
    %95 = vector.broadcast %94 : vector<8x1xf32> to vector<8x8xf32>
    %96 = arith.mulf %91, %95 : vector<8x8xf32>
    %cst_44 = arith.constant dense<0.000000e+00> : vector<8x8xf32>
    %97 = tpu.matmul %96, %81, %cst_44 {dimension_numbers = #tpu.dot_dimension_numbers<[1], [0], [0], [1], [0, 0, 1, 1], [], []>} : vector<8x8xf32>, vector<8x8xf32>, vector<8x8xf32> -> vector<8x8xf32>
    %98 = tpu.concatenate %40, %59, %78, %97 in 1 : vector<8x8xf32>, vector<8x8xf32>, vector<8x8xf32>, vector<8x8xf32> -> vector<8x32xf32>
    %c0_45 = arith.constant 0 : index
    %c0_46 = arith.constant 0 : index
    %99 = vector.load %arg9[%c0_45, %c0_46] : memref<32x32xf32, #tpu.memory_space<vmem>>, vector<32x32xf32>
    %cst_47 = arith.constant dense<0.000000e+00> : vector<8x32xf32>
    %100 = tpu.matmul %98, %99, %cst_47 {dimension_numbers = #tpu.dot_dimension_numbers<[1], [0], [0], [1], [0, 0, 1, 1], [], []>} : vector<8x32xf32>, vector<32x32xf32>, vector<8x32xf32> -> vector<8x32xf32>
    %101 = vector.broadcast %7 : vector<1x32xf32> to vector<8x32xf32>
    %102 = arith.addf %100, %101 : vector<8x32xf32>
    %103 = arith.addf %102, %1 : vector<8x32xf32>
    %cst_48 = arith.constant dense<0.000000e+00> : vector<8xf32>
    %104 = vector.multi_reduction <add>, %103, %cst_48 [1] : vector<8x32xf32> to vector<8xf32>
    %105 = vector.shape_cast %104 : vector<8xf32> to vector<8x1xf32>
    %cst_49 = arith.constant 3.200000e+01 : f32
    %106 = vector.broadcast %cst_49 : f32 to vector<8x1xf32>
    %107 = arith.divf %105, %106 : vector<8x1xf32>
    %108 = arith.mulf %103, %103 : vector<8x32xf32>
    %cst_50 = arith.constant dense<0.000000e+00> : vector<8xf32>
    %109 = vector.multi_reduction <add>, %108, %cst_50 [1] : vector<8x32xf32> to vector<8xf32>
    %110 = vector.shape_cast %109 : vector<8xf32> to vector<8x1xf32>
    %cst_51 = arith.constant 3.200000e+01 : f32
    %111 = vector.broadcast %cst_51 : f32 to vector<8x1xf32>
    %112 = arith.divf %110, %111 : vector<8x1xf32>
    %113 = arith.mulf %107, %107 : vector<8x1xf32>
    %114 = arith.subf %112, %113 : vector<8x1xf32>
    %115 = vector.broadcast %107 : vector<8x1xf32> to vector<8x32xf32>
    %116 = arith.subf %103, %115 : vector<8x32xf32>
    %cst_52 = arith.constant 9.99999996E-13 : f32
    %117 = vector.broadcast %cst_52 : f32 to vector<8x1xf32>
    %118 = arith.addf %114, %117 : vector<8x1xf32>
    %119 = math.rsqrt %118 : vector<8x1xf32>
    %120 = vector.broadcast %119 : vector<8x1xf32> to vector<8x32xf32>
    %121 = arith.mulf %116, %120 : vector<8x32xf32>
    %122 = vector.broadcast %8 : vector<1x32xf32> to vector<8x32xf32>
    %123 = arith.mulf %121, %122 : vector<8x32xf32>
    %124 = vector.broadcast %9 : vector<1x32xf32> to vector<8x32xf32>
    %125 = arith.addf %123, %124 : vector<8x32xf32>
    %c0_53 = arith.constant 0 : index
    %c0_54 = arith.constant 0 : index
    %c0_55 = arith.constant 0 : index
    %126 = vector.load %arg13[%c0_53, %c0_54, %c0_55] : memref<1x8x32xf32, #tpu.memory_space<vmem>>, vector<1x8x32xf32>
    %127 = vector.shape_cast %126 : vector<1x8x32xf32> to vector<8x32xf32>
    %128 = vector.shape_cast %125 : vector<8x32xf32> to vector<1x8x32xf32>
    tpu.vector_store %arg13[%c0_53, %c0_54, %c0_55], %128 {strides = array<i32>} : memref<1x8x32xf32, #tpu.memory_space<vmem>>, vector<1x8x32xf32>,
    return
  }
  func.func @transform_0(%arg0: i32) -> (i32, i32, i32) {
    %c0_i32 = arith.constant 0 : i32
    %c0_i32_0 = arith.constant 0 : i32
    %c0_i32_1 = arith.constant 0 : i32
    return %arg0, %c0_i32, %c0_i32_0 : i32, i32, i32
  }
  func.func @transform_1(%arg0: i32) -> (i32, i32, i32) {
    %c0_i32 = arith.constant 0 : i32
    %c0_i32_0 = arith.constant 0 : i32
    %c0_i32_1 = arith.constant 0 : i32
    return %arg0, %c0_i32, %c0_i32_0 : i32, i32, i32
  }
  func.func @transform_2(%arg0: i32) -> (i32, i32) {
    %c0_i32 = arith.constant 0 : i32
    %c0_i32_0 = arith.constant 0 : i32
    %c0_i32_1 = arith.constant 0 : i32
    return %c0_i32, %c0_i32_0 : i32, i32
  }
  func.func @transform_3(%arg0: i32) -> (i32, i32) {
    %c0_i32 = arith.constant 0 : i32
    %c0_i32_0 = arith.constant 0 : i32
    %c0_i32_1 = arith.constant 0 : i32
    return %c0_i32, %c0_i32_0 : i32, i32
  }
  func.func @transform_4(%arg0: i32) -> (i32, i32) {
    %c0_i32 = arith.constant 0 : i32
    %c0_i32_0 = arith.constant 0 : i32
    %c0_i32_1 = arith.constant 0 : i32
    return %c0_i32, %c0_i32_0 : i32, i32
  }
  func.func @transform_5(%arg0: i32) -> (i32, i32) {
    %c0_i32 = arith.constant 0 : i32
    %c0_i32_0 = arith.constant 0 : i32
    %c0_i32_1 = arith.constant 0 : i32
    return %c0_i32, %c0_i32_0 : i32, i32
  }
  func.func @transform_6(%arg0: i32) -> (i32, i32) {
    %c0_i32 = arith.constant 0 : i32
    %c0_i32_0 = arith.constant 0 : i32
    %c0_i32_1 = arith.constant 0 : i32
    return %c0_i32, %c0_i32_0 : i32, i32
  }
  func.func @transform_7(%arg0: i32) -> (i32, i32) {
    %c0_i32 = arith.constant 0 : i32
    %c0_i32_0 = arith.constant 0 : i32
    %c0_i32_1 = arith.constant 0 : i32
    return %c0_i32, %c0_i32_0 : i32, i32
  }
  func.func @transform_8(%arg0: i32) -> (i32, i32) {
    %c0_i32 = arith.constant 0 : i32
    %c0_i32_0 = arith.constant 0 : i32
    %c0_i32_1 = arith.constant 0 : i32
    return %c0_i32, %c0_i32_0 : i32, i32
  }
  func.func @transform_9(%arg0: i32) -> (i32, i32) {
    %c0_i32 = arith.constant 0 : i32
    %c0_i32_0 = arith.constant 0 : i32
    %c0_i32_1 = arith.constant 0 : i32
    return %c0_i32, %c0_i32_0 : i32, i32
  }
  func.func @transform_10(%arg0: i32) -> (i32, i32) {
    %c0_i32 = arith.constant 0 : i32
    %c0_i32_0 = arith.constant 0 : i32
    %c0_i32_1 = arith.constant 0 : i32
    return %c0_i32, %c0_i32_0 : i32, i32
  }
  func.func @transform_11(%arg0: i32) -> (i32, i32) {
    %c0_i32 = arith.constant 0 : i32
    %c0_i32_0 = arith.constant 0 : i32
    %c0_i32_1 = arith.constant 0 : i32
    return %c0_i32, %c0_i32_0 : i32, i32
  }
  func.func @transform_12(%arg0: i32) -> (i32, i32, i32) {
    %c0_i32 = arith.constant 0 : i32
    %c0_i32_0 = arith.constant 0 : i32
    %c0_i32_1 = arith.constant 0 : i32
    return %arg0, %c0_i32, %c0_i32_0 : i32, i32, i32
  }
}

</mosaic_0001>

<bundles_post_ra>
// kernel: tpu_custom_call.1
= control target key start
LH: loop header
LB: loop body
LE: loop exit
PB: predicated region body
PF: predicated region fallthrough
CT: control target
= control target key end

     0   :  { %s1968_s0 = inlined_call_operand.hbm [shape: f32[2,8,32], index: 0, kind: input, shape index: {}]   ;;  %s1969_s1 = inlined_call_operand.hbm [shape: f32[2,1,8], index: 1, kind: input, shape index: {}]   ;;  %s1970_s2 = inlined_call_operand.hbm [shape: f32[32,32], index: 2, kind: input, shape index: {}]   ;;  %s1971_s3 = inlined_call_operand.vmem [shape: f32[1,32], index: 3, kind: input, shape index: {}]   ;;  %s1972_s4 = inlined_call_operand.hbm [shape: f32[32,32], index: 4, kind: input, shape index: {}]   ;;  %s1973_s5 = inlined_call_operand.vmem [shape: f32[1,32], index: 5, kind: input, shape index: {}]   ;;  %s1974_s6 = inlined_call_operand.hbm [shape: f32[32,32], index: 6, kind: input, shape index: {}]   ;;  %s1975_s7 = inlined_call_operand.vmem [shape: f32[1,32], index: 7, kind: input, shape index: {}]   ;;  %s1976_s8 = inlined_call_operand.hbm [shape: f32[32,32], index: 8, kind: input, shape index: {}]   ;;  %s1977_s9 = inlined_call_operand.vmem [shape: f32[1,32], index: 9, kind: input, shape index: {}]   ;;  %s1978_s10 = inlined_call_operand.vmem [shape: f32[1,32], index: 10, kind: input, shape index: {}]   ;;  %s1979_s11 = inlined_call_operand.vmem [shape: f32[1,32], index: 11, kind: input, shape index: {}]   ;;  %s1980_s12 = inlined_call_operand.hbm [shape: f32[2,8,32], index: 12, kind: output, shape index: {}]  }
   0x1   :  { %1986 = sst [smem:[#allocation25_spill]] %s1970_s2 }
   0x2   :  { %1987 = sst [smem:[#allocation26_spill]] %s1972_s4 }
   0x3   :  { %1988 = sst [smem:[#allocation27_spill]] %s1974_s6 }
   0x4   :  { %1989 = sst [smem:[#allocation28_spill]] %s1976_s8 }
   0x5   :  { %1990 = sst [smem:[#allocation29_spill]] %s1979_s11 }
   0x6   :  { %17 = vsyncpa [#allocation3], 0 }
   0x7   :  { %19 = vsyncpa [#allocation3 + $0x1], 0 }
   0x8   :  { %20 = vsyncpa [#allocation6], 0 }
   0x9   :  { %22 = vsyncpa [#allocation6 + $0x1], 0 }
   0xa   :  { %23 = vsyncpa [#allocation9], 0 }
   0xb   :  { %24 = vsyncpa [#allocation12], 0 }
   0xc   :  { %25 = vsyncpa [#allocation4], 0 }
   0xd   :  { %27 = vsyncpa [#allocation4 + $0x1], 0  ;;  %s1682_s21 = smov 0   ;;  %s1684_s22 = smov 0  }
   0xe   :  { %s1686_s23 = smov 0   ;;  %s1688_s24 = smov 0  }
   0xf LB: > { %1991 = sst [smem:[#allocation20_spill]] %s1590_s21  ;;  %s1706_s28 = sadd.s32 4294967295, %s1602_s24   ;;  %s1602_s24 = sphi %s1688_s24, %s2011_s24   ;;  %s1598_s23 = sphi %s1686_s23, %s2013_s23   ;;  %s1594_s22 = sphi %s1684_s22, %s2015_s22   ;;  %s1590_s21 = sphi %s1682_s21, %s2014_s21  }
  0x10   : > { %1992 = sst [smem:[#allocation21_spill]] %s1598_s23  ;;  %p1177_p0 = scmp.ge.s32.totalorder %s1602_s24, 1 }
  0x11   : > { %s1993_s2 = sld [smem:[#allocation25_spill]]  ;;  %p54_p1 = scmp.eq.s32.totalorder %s1706_s28, 0 }
  0x12   : > { %p326_p2 = scmp.lt.s32.totalorder %s1602_s24, 3  ;;  %s1604_s30 = smov [#allocation7]  }
  0x13   : > { %s339_s13 = sshll.u32 %s1604_s30, 4  ;;  %s1995_s4 = sld [smem:[#allocation26_spill]]  ;;  %s340_s13 = int_to_ptr.vmem [resolvable:$true] %s339_s13 }
  0x14   : > { %p1711_p3 = pnand %p1177_p0, %p326_p2  ;;  %s1997_s6 = sld [smem:[#allocation27_spill]] }
  0x15   : > { %s1605_s25 = smov [#allocation8]   ;;  %s1606_s30 = smov 128  }
  0x16   : > { %p1234_p4 = pneg %p1711_p3  ;;  %s356_s26 = sshll.u32 %s1605_s25, 4  ;;  %s357_s26 = int_to_ptr.vmem [resolvable:$true] %s356_s26 }
  0x17   : > { %s337_s27 = sshll.u32 %s1993_s2, 4  ;;  %s1607_s14 = smov 8   ;;  %s338_s27 = int_to_ptr.hbm [resolvable:$true] %s337_s27 }
  0x18   : > { %p1723_p6 = pnand %p1234_p4, %p54_p1  ;;  %s1998_s8 = sld [smem:[#allocation28_spill]] }
  0x19   : > { %s354_s16 = sshll.u32 %s1995_s4, 4  ;;  %s1608_s19 = smov [#allocation10]   ;;  %s355_s16 = int_to_ptr.hbm [resolvable:$true] %s354_s16 }
  0x1a   : > { %s371_s20 = sshll.u32 %s1997_s6, 4  ;;  %s373_s25 = sshll.u32 %s1608_s19, 4  ;;  %s372_s20 = int_to_ptr.hbm [resolvable:$true] %s371_s20  ;;  %s374_s25 = int_to_ptr.vmem [resolvable:$true] %s373_s25 }
  0x1b   : > { %1237 = dma.hbm_to_vmem [thread:$0]  (!%p1723_p6), %s338_s27, 512, %s340_s13, [#allocation6], %s1606_s30, %s1606_s30, %s1607_s14  }
  0x1c   : > { %1240 = dma.hbm_to_vmem [thread:$0]  (!%p1723_p6), %s355_s16, 512, %s357_s26, [#allocation9], %s1606_s30, %s1606_s30, %s1607_s14  }
  0x1d   : > { %1243 = dma.hbm_to_vmem [thread:$0]  (!%p1723_p6), %s372_s20, 512, %s374_s25, [#allocation9], %s1606_s30, %s1606_s30, %s1607_s14  }
  0x1e   : > { %s388_s18 = sshll.u32 %s1998_s8, 4  ;;  %s1609_s27 = smov [#allocation11]   ;;  %s389_s18 = int_to_ptr.hbm [resolvable:$true] %s388_s18 }
  0x1f   : > { %s390_s13 = sshll.u32 %s1609_s27, 4  ;;  %s1176_s2 = sadd.s32 4294967294, %s1602_s24   ;;  %s391_s13 = int_to_ptr.vmem [resolvable:$true] %s390_s13 }
  0x20   : > { %1246 = dma.hbm_to_vmem [thread:$0]  (!%p1723_p6), %s389_s18, 512, %s391_s13, [#allocation12], %s1606_s30, %s1606_s30, %s1607_s14  }
  0x21   : > { %s1743_s16 = sadd.s32 1, %s1602_s24   ;;  %s40_s15 = sadd.s32 1, %s1598_s23 }
  0x22   : > { %1999 = sst [smem:[#allocation22_spill]] %s1743_s16  ;;  %s37_s26 = ssub.s32 %s1602_s24, %s1743_s16 }
  0x23   : > { %p38_p7 = scmp.eq.s32.totalorder %s37_s26, 0  ;;  %p47_p8 = scmp.ne.s32.totalorder %s1598_s23, %s1594_s22 }
  0x24   : > { %p48_p9 = scmp.eq.s32.totalorder %s1602_s24, 0  ;;  %p53_p10 = scmp.ne.s32.totalorder %s1594_s22, %s1590_s21 }
  0x25   : > { %s1754_s20 = scalar_select %p38_p7, %s1598_s23, %s40_s15  }
  0x26   : > { %p1756_p11 = por %p48_p9, %p47_p8  ;;  %p1762_p12 = por %p54_p1, %p53_p10 }
  0x27   : > { %2000 = sst [smem:[#allocation23_spill]] %s1754_s20  ;;  %p313_p13 = scmp.eq.s32.totalorder %s1706_s28, 1 }
  0x28   : > { %p319_p0 = scmp.eq.s32.totalorder %s1176_s2, 1  ;;  %p1262_p2 = scmp.lt.s32.totalorder %s1602_s24, 2 }
  0x29   : > { %s1769_s30 = sand.u32 1, %s1598_s23   ;;  %p1771_p4 = por %p313_p13, %p47_p8 }
  0x2a   : > { %p1775_p6 = por %p319_p0, %p53_p10  ;;  %s1183_s25 = sshll.u32 %s1769_s30, 3 }
  0x2b   : > { %s1184_s27 = sshll.u32 %s1602_s24, 3  ;;  %s417_s2 = scalar_lea.vmem [#allocation2], %s1183_s25 }
  0x2c   : > { %s2004_s18 = scalar_select %p1775_p6, 1, 0 }
  0x2d   : > { %s421_s15 = scalar_lea.hbm %s1968_s0, %s1184_s27  ;;  %s425_s4 = sshll.u32 %s417_s2, 4  ;;  %s426_s4 = int_to_ptr.vmem [resolvable:$true] %s425_s4 }
  0x2e   : > { %2005 = sst [smem:[#allocation24_spill]] %s2004_s18  ;;  %s423_s6 = sshll.u32 %s421_s15, 4  ;;  %s424_s6 = int_to_ptr.hbm [resolvable:$true] %s423_s6 }
  0x2f   : > { %p1786_p7 = pnand %p1262_p2, %p1756_p11  ;;  %s432_s20 = sand.u32 1, %s1602_s24  }
  0x30   : > { %s414_s23 = scalar_lea.sflag [#allocation3], %s1769_s30  ;;  %s1460_s16 = sshra.s32 %s424_s6, 4  ;;  %s1461_s16 = int_to_ptr.hbm [resolvable:$true] %s1460_s16 }
  0x31   : > { %s1462_s18 = scalar_lea.hbm %s1461_s16, 8  ;;  %p1464_p9 = pneg %p1786_p7 }
  0x32   : > { %p1463_p8 = scmp.ne.s32.totalorder %s1461_s16, %s1462_s18  ;;  %s1467_s27 = scalar_lea.hbm %s1968_s0, 16 }
  0x33   : > { %p1468_p11 = scmp.lt.s32.totalorder %s1461_s16, %s1968_s0  ;;  %p1469_p0 = scmp.lt.s32.totalorder %s1467_s27, %s1462_s18 }
  0x34   : > { %p1465_p10 = pnand %p1464_p9, %p1463_p8 }
  0x35   : > { %p1470_p2 = por %p1469_p0, %p1468_p11 }
  0x36   : > { %p1466_p13 = pneg %p1465_p10 }
  0x38   : > { %p1471_p5 = pnand %p1470_p2, %p1466_p13 }
  0x3a   : > { %1474 = shalt.err (!%p1471_p5)
}
  0x3b   : > { %1250 = dma.hbm_to_vmem [thread:$0]  (!%p1786_p7), %s424_s6, 128, %s426_s4, %s414_s23  }
  0x3c   : > { %s438_s21 = scalar_lea.hbm %s1969_s1, %s1602_s24  ;;  %s435_s25 = scalar_lea.vmem [#allocation5], %s1769_s30 }
  0x3d   : > { %s442_s19 = sshll.u32 %s435_s25, 4  ;;  %s440_s11 = sshll.u32 %s438_s21, 4  ;;  %s443_s19 = int_to_ptr.vmem [resolvable:$true] %s442_s19  ;;  %s441_s11 = int_to_ptr.hbm [resolvable:$true] %s440_s11 }
  0x3e   : > { %s433_s16 = scalar_lea.sflag [#allocation6], %s432_s20  ;;  %s1490_s18 = sshra.s32 %s441_s11, 4  ;;  %s1491_s18 = int_to_ptr.hbm [resolvable:$true] %s1490_s18 }
  0x3f   : > { %s1492_s27 = scalar_lea.hbm %s1491_s18, 1  ;;  %s1497_s6 = scalar_lea.hbm %s1969_s1, 2 }
  0x40   : > { %p1493_p5 = scmp.ne.s32.totalorder %s1491_s18, %s1492_s27  ;;  %p1498_p13 = scmp.lt.s32.totalorder %s1491_s18, %s1969_s1 }
  0x41   : > { %p1499_p11 = scmp.lt.s32.totalorder %s1497_s6, %s1492_s27 }
  0x42   : > { %p1495_p8 = pnand %p1493_p5, %p1464_p9 }
  0x43   : > { %p1500_p0 = por %p1499_p11, %p1498_p13 }
  0x44   : > { %p1496_p10 = pneg %p1495_p8 }
  0x46   : > { %p1501_p2 = pnand %p1500_p0, %p1496_p10 }
  0x48   : > { %1504 = shalt.err (!%p1501_p2)
}
  0x49   : > { %1253 = dma.hbm_to_vmem [thread:$0]  (!%p1786_p7), %s441_s11, 16, %s443_s19, %s433_s16  }
  0x4a   : > { %451 = sbr.rel (%p1711_p3) target bundleno = 1286 (0x506), region = 68  ;;  %s1824_s21 = sand.u32 (!%p1711_p3), 1, %s1594_s22  }
  0x4b   : > { %s1186_s20 = sshll.u32 (!%p1711_p3), %s1824_s21, 3  ;;  %s454_s30 = scalar_lea.sflag (!%p1711_p3), [#allocation3], %s1824_s21 }
  0x4c   : > { %s457_s15 = scalar_lea.vmem (!%p1711_p3), [#allocation2], %s1186_s20 }
  0x4f   : > { %1565 = dma.done.wait (%p1762_p12), %s454_s30, 128  }
  0x50   : > { %1567 = vsyncadd (%p1762_p12), %s454_s30, 4294967168  ;;  %s463_s8 = sand.u32 1, %s1706_s28   ;;  %s466_s29 = scalar_lea.vmem [#allocation5], %s1824_s21 }
  0x51   : > { %s464_s11 = scalar_lea.sflag [#allocation6], %s463_s8 }
  0x52   : > { %1569 = dma.done.wait (%p1762_p12), %s464_s11, 16  }
  0x53   : > { %1571 = vsyncadd (%p1762_p12), %s464_s11, 4294967280 }
  0x54   : > { %1573 = dma.done.wait (%p54_p1), [#allocation6], 512  }
  0x55   : > { %1575 = vsyncadd (%p54_p1), [#allocation6], 4294966784 }
  0x56   : > { %1577 = dma.done.wait (%p54_p1), [#allocation9], 1024  }
  0x57   : > { %1579 = vsyncadd (%p54_p1), [#allocation9], 4294966272 }
  0x58   : > { %1581 = dma.done.wait (%p54_p1), [#allocation12], 512  }
  0x59   : > { %1583 = vsyncadd (%p54_p1), [#allocation12], 4294966784  ;;  %v574_v0 = vld [vmem:[#allocation8 + $0x18] sm:$0xff]  ;;  %v573_v1 = vld [vmem:[#allocation8 + $0x10] sm:$0xff]  ;;  %vm547_vm0 = vcmask 261120   ;;  %vm625_vm1 = vcmask 64512  }
  0x5a   : > { %v543_v2 = vld [vmem:[#allocation7 + $0x18] sm:$0xff]  ;;  %590 = vmatpush.msra.mxu1 %v574_v0  ;;  %v542_v3 = vld [vmem:[#allocation7 + $0x10] sm:$0xff]  ;;  %v572_v4 = vld [vmem:[#allocation8 + $0x8] sm:$0xff]  ;;  %s1610_s16 = smov 104   ;;  %s1611_s18 = smov 120  }
  0x5b   : > { %563 = vmatpush.msra.mxu0 %v543_v2  ;;  %v571_v5 = vld [vmem:[#allocation8] sm:$0xff]  ;;  %v541_v6 = vld [vmem:[#allocation7 + $0x8] sm:$0xff]  ;;  %s1612_s27 = smov 112   ;;  %v601_v15 = vld [vmem:[#allocation10 + $0x18] sm:$0xff]  ;;  %s1613_s6 = smov 8  }
  0x5c   : > { %591 = vmatpush.msra.mxu1 %v573_v1  ;;  %v540_v7 = vld [vmem:[#allocation7] sm:$0xff]  ;;  %v1852_v8 = vld [vmem:[%s457_s15] sm:$0xff]  ;;  %617 = vmatpush.msra.mxu2 %v601_v15  ;;  %s1614_s23 = smov 16   ;;  %s1615_s26 = smov 24  }
  0x5d   : > { %564 = vmatpush.msra.mxu0 %v542_v3  ;;  %v1313_v9 = vld [vmem:[%s1973_s5] ss:$0 sm:$0xff]  ;;  %v600_v16 = vld [vmem:[#allocation10 + $0x10] sm:$0xff]  ;;  %v598_v18 = vld [vmem:[#allocation10] sm:$0xff]  ;;  %s1209_s8 = sshll.u32 %s1706_s28, 3  ;;  %s531_s28 = scalar_lea.vmem [#allocation13], %s1186_s20 }
  0x5e   : > { %592 = vmatpush.msra.mxu1 %v572_v4  ;;  %v1314_v10 = vld [vmem:[%s1971_s3] ss:$0 sm:$0xff]  ;;  %618 = vmatpush.msra.mxu2 %v600_v16  ;;  %s1044_s25 = scalar_lea.hbm %s1980_s12, %s1209_s8  ;;  %s1034_s4 = scalar_lea.sflag [#allocation4], %s1824_s21 }
  0x5f   : > { %565 = vmatpush.msra.mxu0 %v541_v6  ;;  %v599_v17 = vld [vmem:[#allocation10 + $0x8] sm:$0xff]  ;;  %s1048_s13 = sshll.u32 %s1044_s25, 4  ;;  %s1540_s20 = scalar_lea.hbm %s1980_s12, 16  ;;  %s1049_s13 = int_to_ptr.hbm [resolvable:$true] %s1048_s13 }
  0x60   : > { %593 = vmatpush.msra.mxu1 %v571_v5  ;;  %619 = vmatpush.msra.mxu2 %v599_v17  ;;  %v1315_v25 = vld [vmem:[%s466_s29] ss:$0 sm:$0xff] }
  0x61   : > { %566 = vmatpush.msra.mxu0 %v540_v7  ;;  %1193 = vmatmul.msk.f32.vlgmr.msra.gmra.mxu1 %vm547_vm0, %v1852_v8  ;;  %v1316_v30 = vld [vmem:[%s1975_s7] ss:$0 sm:$0xff] }
  0x62   : > { %1192 = vmatmul.msk.f32.vlgmr.msra.gmra.mxu0 %vm547_vm0, %v1852_v8  ;;  %620 = vmatpush.msra.mxu2 %v598_v18 }
  0x63   : > { %1194 = vmatmul.msk.f32.vlgmr.msra.gmra.mxu2 %vm547_vm0, %v1852_v8 }
  0xde   : > { %v595_v11 = vpop.f32.mrf.mxu1 }
  0xdf   : > { %v568_v12 = vpop.f32.mrf.mxu0  ;;  %v596_v13 = vadd.f32 %v1313_v9, %v595_v11 }
  0xe0   : > { %v569_v14 = vadd.f32 %v1314_v10, %v568_v12 }
  0xe1   : > { %867 = vrot.lane.b32.xlu2 %v596_v13, %s1610_s16  ;;  %706 = vrot.lane.b32.xlu1 %v596_v13, %s1611_s18 }
  0xe2   : > { %787 = vrot.lane.b32.xlu0 %v596_v13, %s1612_s27  ;;  %1195 = vmatpush.xpose.msk.msra.mxu3 %vm625_vm1, %v596_v13 }
  0xe5   : > { %1196 = vmatmul.msk.f32.vlgmr.msra.gmra.mxu3 %vm625_vm1, %v569_v14 }
  0xe6   : > { %v622_v31 = vpop.f32.mrf.mxu2 }
  0xe7   : > { %v1886_v32 = vadd.f32 %v1316_v30, %v622_v31 }
  0xe9   : > { %865 = vrot.lane.b32.xlu2 %v569_v14, %s1610_s16  ;;  %704 = vrot.lane.b32.xlu1 %v569_v14, %s1611_s18 }
  0xea   : > { %785 = vrot.lane.b32.xlu0 %v569_v14, %s1612_s27  ;;  %699 = vmatpush.msrb.mxu3 %v1886_v32 }
 0x13b   : > { %v868_v20 = vpop.permute.xlu2 %867 }
 0x143   : > { %v866_v24 = vpop.permute.xlu2 %865 }
 0x153   : > { %v707_v19 = vpop.permute.xlu1 %706 }
 0x154   : > { %v788_v21 = vpop.permute.xlu0 %787  ;;  %1198 = vmatpush.xpose.msk.msrb.mxu0 %vm625_vm1, %v707_v19 }
 0x155   : > { %1201 = vmatpush.xpose.msk.msrb.mxu2 %vm625_vm1, %v788_v21 }
 0x158   : > { %1204 = vmatpush.xpose.msk.msra.mxu0 %vm625_vm1, %v868_v20 }
 0x15b   : > { %v705_v22 = vpop.permute.xlu1 %704 }
 0x15c   : > { %v786_v23 = vpop.permute.xlu0 %785  ;;  %1199 = vmatmul.msk.f32.vlgmr.msrb.gmra.mxu0 %vm625_vm1, %v705_v22 }
 0x15d   : > { %1202 = vmatmul.msk.f32.vlgmr.msrb.gmra.mxu2 %vm625_vm1, %v786_v23 }
 0x164   : > { %1205 = vmatmul.msk.f32.vlgmr.msra.gmra.mxu0 %vm625_vm1, %v866_v24 }
 0x168   : > { %v649_v26 = vpop.f32.mrf.mxu3 }
 0x169   : > { %v652_v27 = vmul.f32 0.35355338, %v649_v26 }
 0x16b   : > { %v656_v28 = vadd.f32 %v1315_v25, %v652_v27 }
 0x16d   : > { %v657_v29 = vsel %vm625_vm1, %v656_v28, -inf }
 0x16e   : > { %658 = vmax.xlane.f32.xlu0 %v657_v29 }
 0x1d9   : > { %v729_v33 = vpop.f32.mrf.mxu0 }
 0x1da   : > { %v732_v34 = vmul.f32 0.35355338, %v729_v33 }
 0x1dc   : > { %v733_v35 = vadd.f32 %v1315_v25, %v732_v34 }
 0x1de   : > { %v734_v36 = vsel %vm625_vm1, %v733_v35, -inf }
 0x1df   : > { %735 = vmax.xlane.f32.xlu1 %v734_v36 }
 0x1e0   : > { %v810_v37 = vpop.f32.mrf.mxu2 }
 0x1e1   : > { %v813_v38 = vmul.f32 0.35355338, %v810_v37  ;;  %v659_v39 = vpop.xlane.xlu0 %658  ;;  %v890_v41 = vpop.f32.mrf.mxu0 }
 0x1e2   : > { %v660_v40 = vsub.f32 %v656_v28, %v659_v39  ;;  %v893_v44 = vmul.f32 0.35355338, %v890_v41 }
 0x1e3   : > { %v814_v42 = vadd.f32 %v1315_v25, %v813_v38 }
 0x1e4   : > { %v661_v43 = vmul.f32 1.442695, %v660_v40  ;;  %v894_v46 = vadd.f32 %v1315_v25, %v893_v44 }
 0x1e5   : > { %v815_v45 = vsel %vm625_vm1, %v814_v42, -inf }
 0x1e6   : > { %1320 = vpow2.f32 %v661_v43  ;;  %816 = vmax.xlane.f32.xlu2 %v815_v45  ;;  %v895_v48 = vsel %vm625_vm1, %v894_v46, -inf }
 0x1ec   : > { %v1321_v47 = vpop.eup %1320 }
 0x1ed   : > { %v663_v49 = vsel %vm625_vm1, %v1321_v47, 0.0 }
 0x1ee   : > { %896 = vmax.xlane.f32.xlu2 %v895_v48  ;;  %664 = vadd.xlane.f32.xlu0 %v663_v49 }
 0x252   : > { %v736_v50 = vpop.xlane.xlu1 %735 }
 0x253   : > { %v737_v51 = vsub.f32 %v733_v35, %v736_v50 }
 0x255   : > { %v738_v52 = vmul.f32 1.442695, %v737_v51 }
 0x257   : > { %1322 = vpow2.f32 %v738_v52 }
 0x259   : > { %v817_v53 = vpop.xlane.xlu2 %816 }
 0x25a   : > { %v818_v54 = vsub.f32 %v814_v42, %v817_v53 }
 0x25c   : > { %v819_v55 = vmul.f32 1.442695, %v818_v54 }
 0x25d   : > { %v1893_v56 = vpop.eup %1322 }
 0x25e   : > { %1324 = vpow2.f32 %v819_v55  ;;  %v740_v57 = vsel %vm625_vm1, %v1893_v56, 0.0 }
 0x25f   : > { %741 = vadd.xlane.f32.xlu1 %v740_v57  ;;  %v965_v57 = vld [vmem:[#allocation11 + $0x18] sm:$0xff] }
 0x260   : > { %984 = vmatpush.msra.mxu2 %v965_v57 }
 0x261   : > { %v897_v58 = vpop.xlane.xlu2 %896  ;;  %v665_v59 = vpop.xlane.xlu0 %664 }
 0x262   : > { %v898_v60 = vsub.f32 %v894_v46, %v897_v58  ;;  %1326 = vrcp.f32 %v665_v59  ;;  %v677_v4 = vand.u32 2147483648, %v665_v59  ;;  %v675_v6 = vand.u32 2147483647, %v665_v59  ;;  %v964_v58 = vld [vmem:[#allocation11 + $0x10] sm:$0xff] }
 0x263   : > { %vm671_vm3 = vweird.f32 %v665_v59  ;;  %985 = vmatpush.msra.mxu2 %v964_v58 }
 0x264   : > { %v1897_v61 = vpop.eup %1324  ;;  %v899_v62 = vmul.f32 1.442695, %v898_v60  ;;  %v678_v10 = vor.u32 1.1754944e-38, %v677_v4  ;;  %vm676_vm5 = vcmp.eq.f32.partialorder %v675_v6, 8.507059e+37  ;;  %v962_v60 = vld [vmem:[#allocation11] sm:$0xff] }
 0x265   : > { %v821_v63 = vsel %vm625_vm1, %v1897_v61, 0.0 }
 0x266   : > { %1328 = vpow2.f32 %v899_v62  ;;  %822 = vadd.xlane.f32.xlu2 %v821_v63 }
 0x268   : > { %v1327_v0 = vpop.eup %1326 }
 0x269   : > { %v667_v1 = vmul.f32 %v1327_v0, %v665_v59  ;;  %vm672_vm2 = vweird.f32 %v1327_v0  ;;  %v963_v59 = vld [vmem:[#allocation11 + $0x8] sm:$0xff] }
 0x26a   : > { %vm673_vm4 = vmor %vm671_vm3, %vm672_vm2  ;;  %986 = vmatpush.msra.mxu2 %v963_v59 }
 0x26b   : > { %v668_v2 = vsub.f32 1.0, %v667_v1 }
 0x26c   : > { %v1901_v3 = vpop.eup %1328  ;;  %987 = vmatpush.msra.mxu2 %v962_v60 }
 0x26d   : > { %v669_v5 = vmul.f32 %v1327_v0, %v668_v2  ;;  %v901_v7 = vsel %vm625_vm1, %v1901_v3, 0.0 }
 0x26e   : > { %902 = vadd.xlane.f32.xlu0 %v901_v7 }
 0x26f   : > { %v670_v9 = vadd.f32 %v1327_v0, %v669_v5 }
 0x271   : > { %v674_v11 = vsel %vm673_vm4, %v1327_v0, %v670_v9  ;;  %vm958_vm4 = vcmask 130048  }
 0x272   : > { %v679_v12 = vsel %vm676_vm5, %v678_v10, %v674_v11  ;;  %vm960_vm5 = vcmask 195584   ;;  %v1616_v11 = vmov 32.0  }
 0x273   : > { %v680_v13 = vmul.f32 %v1321_v47, %v679_v12 }
 0x275   : > { %1197 = vmatmul.msk.f32.vlgmr.msrb.gmra.mxu3 %vm625_vm1, %v680_v13 }
 0x278   : > { %759 = vrot.lane.b32.xlu1 %v1886_v32, %s1611_s18  ;;  %s2007_s18 = sld [smem:[#allocation29_spill]] }
 0x27e   : > { %839 = vrot.lane.b32.xlu2 %v1886_v32, %s1612_s27  ;;  %s1046_s27 = sshll.u32 %s531_s28, 4  ;;  %s1047_s27 = int_to_ptr.vmem [resolvable:$true] %s1046_s27 }
 0x282   : > { %919 = vrot.lane.b32.xlu0 %v1886_v32, %s1610_s16 }
 0x2d2   : > { %v742_v14 = vpop.xlane.xlu1 %741 }
 0x2d3   : > { %1330 = vrcp.f32 %v742_v14  ;;  %v754_v22 = vand.u32 2147483648, %v742_v14  ;;  %vm748_vm7 = vweird.f32 %v742_v14  ;;  %v752_v26 = vand.u32 2147483647, %v742_v14 }
 0x2d5   : > { %v755_v30 = vor.u32 1.1754944e-38, %v754_v22  ;;  %vm753_vm10 = vcmp.eq.f32.partialorder %v752_v26, 8.507059e+37 }
 0x2d9   : > { %v1331_v15 = vpop.eup %1330  ;;  %v823_v16 = vpop.xlane.xlu2 %822 }
 0x2da   : > { %v744_v17 = vmul.f32 %v1331_v15, %v742_v14  ;;  %1332 = vrcp.f32 %v823_v16  ;;  %vm749_vm6 = vweird.f32 %v1331_v15  ;;  %v835_v28 = vand.u32 2147483648, %v823_v16 }
 0x2db   : > { %vm750_vm8 = vmor %vm748_vm7, %vm749_vm6  ;;  %v833_v32 = vand.u32 2147483647, %v823_v16  ;;  %vm829_vm11 = vweird.f32 %v823_v16 }
 0x2dc   : > { %v745_v18 = vsub.f32 1.0, %v744_v17  ;;  %v836_v36 = vor.u32 1.1754944e-38, %v835_v28 }
 0x2dd   : > { %vm834_vm13 = vcmp.eq.f32.partialorder %v833_v32, 8.507059e+37 }
 0x2de   : > { %v746_v19 = vmul.f32 %v1331_v15, %v745_v18 }
 0x2e0   : > { %v1333_v20 = vpop.eup %1332  ;;  %v747_v21 = vadd.f32 %v1331_v15, %v746_v19 }
 0x2e1   : > { %v825_v23 = vmul.f32 %v1333_v20, %v823_v16  ;;  %v840_v24 = vpop.permute.xlu2 %839  ;;  %v903_v25 = vpop.xlane.xlu0 %902  ;;  %vm830_vm9 = vweird.f32 %v1333_v20 }
 0x2e2   : > { %1334 = vrcp.f32 %v903_v25  ;;  %860 = vmatpush.msra.mxu3 %v840_v24  ;;  %v751_v29 = vsel %vm750_vm8, %v1331_v15, %v747_v21  ;;  %vm831_vm12 = vmor %vm829_vm11, %vm830_vm9  ;;  %v915_v44 = vand.u32 2147483648, %v903_v25  ;;  %v913_v46 = vand.u32 2147483647, %v903_v25 }
 0x2e3   : > { %v826_v27 = vsub.f32 1.0, %v825_v23  ;;  %v756_v34 = vsel %vm753_vm10, %v755_v30, %v751_v29  ;;  %vm909_vm15 = vweird.f32 %v903_v25  ;;  %1336 = vrcp.f32 %v1616_v11 }
 0x2e4   : > { %v757_v41 = vmul.f32 %v1893_v56, %v756_v34  ;;  %v916_v48 = vor.u32 1.1754944e-38, %v915_v44  ;;  %vm914_vm3 = vcmp.eq.f32.partialorder %v913_v46, 8.507059e+37  ;;  %v1319_v34 = vld [vmem:[%s2007_s18] ss:$0 sm:$0xff] }
 0x2e5   : > { %v827_v31 = vmul.f32 %v1333_v20, %v826_v27 }
 0x2e7   : > { %v828_v33 = vadd.f32 %v1333_v20, %v827_v31  ;;  %v1318_v31 = vld [vmem:[%s1978_s10] ss:$0 sm:$0xff] }
 0x2e8   : > { %v1335_v35 = vpop.eup %1334 }
 0x2e9   : > { %v832_v37 = vsel %vm831_vm12, %v1333_v20, %v828_v33  ;;  %v905_v38 = vmul.f32 %v1335_v35, %v903_v25  ;;  %vm910_vm14 = vweird.f32 %v1335_v35  ;;  %v1337_v12 = vpop.eup %1336 }
 0x2ea   : > { %v837_v39 = vsel %vm834_vm13, %v836_v36, %v832_v37  ;;  %v760_v40 = vpop.permute.xlu1 %759  ;;  %vm911_vm2 = vmor %vm909_vm15, %vm910_vm14  ;;  %v997_v13 = vmul.f32 32.0, %v1337_v12 }
 0x2eb   : > { %v906_v42 = vsub.f32 1.0, %v905_v38  ;;  %780 = vmatpush.msrb.mxu1 %v760_v40  ;;  %v838_v43 = vmul.f32 %v1897_v61, %v837_v39 }
 0x2ec   : > { %1200 = vmatmul.msk.f32.vlgmr.msrb.gmra.mxu1 %vm625_vm1, %v757_v41  ;;  %v998_v14 = vsub.f32 1.0, %v997_v13 }
 0x2ed   : > { %v907_v45 = vmul.f32 %v1335_v35, %v906_v42  ;;  %1203 = vmatmul.msk.f32.vlgmr.msra.gmra.mxu3 %vm625_vm1, %v838_v43 }
 0x2ee   : > { %v999_v15 = vmul.f32 %v1337_v12, %v998_v14 }
 0x2ef   : > { %v908_v47 = vadd.f32 %v1335_v35, %v907_v45 }
 0x2f0   : > { %v1000_v16 = vadd.f32 %v1337_v12, %v999_v15 }
 0x2f1   : > { %v912_v49 = vsel %vm911_vm2, %v1335_v35, %v908_v47 }
 0x2f2   : > { %v917_v50 = vsel %vm914_vm3, %v916_v48, %v912_v49 }
 0x2f3   : > { %v918_v51 = vmul.f32 %v1901_v3, %v917_v50  ;;  %v1317_v3 = vld [vmem:[%s1977_s9] ss:$0 sm:$0xff] }
 0x2f4   : > { %v920_v52 = vpop.permute.xlu0 %919 }
 0x2f5   : > { %940 = vmatpush.msra.mxu1 %v920_v52 }
 0x2f6   : > { %1206 = vmatmul.msk.f32.vlgmr.msra.gmra.mxu1 %vm625_vm1, %v918_v51 }
 0x2f8   : > { %v701_v53 = vpop.f32.mrf.mxu3 }
 0x369   : > { %v782_v54 = vpop.f32.mrf.mxu1 }
 0x36a   : > { %946 = vrot.lane.b32.xlu1 %v782_v54, %s1613_s6  ;;  %s1534_s6 = sshra.s32 %s1049_s13, 4  ;;  %s1535_s6 = int_to_ptr.hbm [resolvable:$true] %s1534_s6 }
 0x36b   : > { %p1541_p7 = scmp.lt.s32.totalorder %s1535_s6, %s1980_s12 }
 0x370   : > { %v862_v55 = vpop.f32.mrf.mxu3 }
 0x371   : > { %950 = vrot.lane.b32.xlu0 %v862_v55, %s1614_s23  ;;  %s1536_s23 = scalar_lea.hbm %s1535_s6, 8 }
 0x372   : > { %p1537_p1 = scmp.ne.s32.totalorder %s1535_s6, %s1536_s23  ;;  %p1542_p9 = scmp.lt.s32.totalorder %s1540_s20, %s1536_s23 }
 0x373   : > { %v942_v56 = vpop.f32.mrf.mxu1 }
 0x374   : > { %954 = vrot.lane.b32.xlu2 %v942_v56, %s1615_s26  ;;  %p1538_p3 = pnand %p1537_p1, %p1771_p4  ;;  %p1543_p5 = por %p1542_p9, %p1541_p7 }
 0x376   : > { %p1539_p12 = pneg %p1538_p3 }
 0x378   : > { %p1544_p8 = pnand %p1543_p5, %p1539_p12 }
 0x3ce   : > { %v955_v0 = vpop.permute.xlu2 %954 }
 0x3dc   : > { %v947_v61 = vpop.permute.xlu1 %946 }
 0x3dd   : > { %v957_v62 = vsel %vm625_vm1, %v701_v53, %v947_v61  ;;  %vm1001_vm1 = vweird.f32 %v1337_v12 }
 0x3de   : > { %v1002_v17 = vsel %vm1001_vm1, %v1337_v12, %v1000_v16 }
 0x3e3   : > { %v951_v63 = vpop.permute.xlu0 %950 }
 0x3e4   : > { %v959_v1 = vsel %vm958_vm4, %v957_v62, %v951_v63 }
 0x3e5   : > { %v961_v2 = vsel %vm960_vm5, %v959_v1, %v955_v0 }
 0x3e6   : > { %1207 = vmatmul.msk.f32.vlgmr.msra.gmra.mxu2 %vm547_vm0, %v961_v2 }
 0x469   : > { %v989_v4 = vpop.f32.mrf.mxu2 }
 0x46a   : > { %v990_v5 = vadd.f32 %v1317_v3, %v989_v4 }
 0x46c   : > { %v992_v6 = vadd.f32 %v990_v5, %v1852_v8 }
 0x46e   : > { %v993_v7 = vsel %vm547_vm0, %v992_v6, 0.0  ;;  %v1004_v9 = vmul.f32 %v992_v6, %v992_v6 }
 0x46f   : > { %994 = vadd.xlane.f32.xlu1 %v993_v7 }
 0x470   : > { %v1005_v10 = vsel %vm547_vm0, %v1004_v9, 0.0 }
 0x471   : > { %1006 = vadd.xlane.f32.xlu0 %v1005_v10 }
 0x4e2   : > { %v995_v18 = vpop.xlane.xlu1 %994 }
 0x4e3   : > { %v1003_v19 = vmul.f32 %v1002_v17, %v995_v18 }
 0x4e4   : > { %v1007_v8 = vpop.xlane.xlu0 %1006 }
 0x4e5   : > { %v1009_v20 = vmul.f32 %v1003_v19, %v1003_v19  ;;  %v1008_v21 = vmul.f32 %v1007_v8, %v1002_v17  ;;  %v1011_v30 = vsub.f32 %v992_v6, %v1003_v19 }
 0x4e7   : > { %v1010_v22 = vsub.f32 %v1008_v21, %v1009_v20 }
 0x4e9   : > { %v1012_v23 = vadd.f32 1e-12, %v1010_v22 }
 0x4eb   : > { %1338 = vrsqrt.f32 %v1012_v23  ;;  %vm1019_vm7 = vweird.f32 %v1012_v23 }
 0x4f1   : > { %v1339_v24 = vpop.eup %1338 }
 0x4f2   : > { %v1014_v25 = vmul.f32 %v1339_v24, %v1012_v23  ;;  %vm1020_vm6 = vweird.f32 %v1339_v24 }
 0x4f3   : > { %vm1021_vm8 = vmor %vm1019_vm7, %vm1020_vm6 }
 0x4f4   : > { %v1015_v26 = vmul.f32 %v1339_v24, %v1014_v25 }
 0x4f6   : > { %v1016_v27 = vmul.f32 0.5, %v1015_v26 }
 0x4f8   : > { %v1017_v28 = vsub.f32 1.5, %v1016_v27 }
 0x4fa   : > { %v1018_v29 = vmul.f32 %v1339_v24, %v1017_v28 }
 0x4fc   : > { %v1022_v32 = vsel %vm1021_vm8, %v1339_v24, %v1018_v29 }
 0x4fd   : > { %v1023_v33 = vmul.f32 %v1022_v32, %v1011_v30 }
 0x4ff   : > { %v1027_v35 = vmul.f32 %v1318_v31, %v1023_v33 }
 0x501   : > { %v1031_v36 = vadd.f32 %v1319_v34, %v1027_v35 }
 0x503   : > { %1032 = vst.msk [vmem:[%s531_s28] sm:$0xff] %vm547_vm0, %v1031_v36 }
 0x504   : > { %1547 = shalt.err (!%p1544_p8)
}
 0x505   : > { %1232 = dma.vmem_to_hbm [thread:$0]  (%p1771_p4), %s1047_s27, 128, %s1049_s13, %s1034_s4  }
 0x506 PF: > { %s2008_s21 = sld [smem:[#allocation20_spill]]  ;;  %p2010_p10 = scmp.ge.s32.totalorder %s1602_s24, 2 }
 0x508   : > { %p1255_p13 = pnand %p2010_p10, %p1775_p6 }
 0x50a   : > { %p1256_p11 = pneg %p1255_p13 }
 0x50c   : > { %s1060_s29 = sand.u32 1, %s2008_s21  }
 0x50d   : > { %s1061_s17 = scalar_lea.sflag [#allocation4], %s1060_s29 }
 0x50e   : > { %1585 = dma.done.wait (%p1256_p11), %s1061_s17, 128  }
 0x50f   : > { %1587 = vsyncadd (%p1256_p11), %s1061_s17, 4294967168  ;;  %s2011_s24 = sld [smem:[#allocation22_spill]]  ;;  %s2014_s21 = smov %s1594_s22 }
 0x510   : > { %s2012_s2 = sld [smem:[#allocation21_spill]] }
 0x511   : > { %s2013_s23 = sld [smem:[#allocation23_spill]] }
 0x515   : > { %p30_p0 = scmp.ge.s32.totalorder %s2011_s24, 4  }
 0x516   : > { %s2015_s22 = smov %s2012_s2 }
 0x517   :  { %32 = sbr.rel (!%p30_p0) target bundleno = 15 (0xf), region = 142 }
 0x51c   :  { %1067 = vsyncpa [#allocation3], 1 }
 0x51d   :  { %1069 = vsyncpa [#allocation3 + $0x1], 1 }
 0x51e   :  { %1070 = vsyncpa [#allocation6], 1 }
 0x51f   :  { %1072 = vsyncpa [#allocation6 + $0x1], 1 }
 0x520   :  { %1073 = vsyncpa [#allocation9], 1 }
 0x521   :  { %1074 = vsyncpa [#allocation12], 1 }
 0x522   :  { %1075 = vsyncpa [#allocation4], 1 }
 0x523   :  { %1077 = vsyncpa [#allocation4 + $0x1], 1 }

</bundles_post_ra>
